<compile_context>
chip_gen: v5e
topology: v5e:2x2
jax: 0.10.0
libtpu: 0.0.40
codegen_flags: <defaults>
</compile_context>

<pallas_src>
import functools

import numpy as np
import jax
import jax.numpy as jnp
from jax.experimental import pallas as pl
from jax.experimental.pallas import tpu as pltpu


def _encoder_kernel(x_ref, wt_ref, b_ref, m_ref, o_ref, acc_ref, *, cin, inv_hw):
    """One grid step = (image n, HW tile t).

    x_ref : (1, Cin, HWt) bf16   -- image tile, HW on lanes, Cin on sublanes
    wt_ref: (FIN, Cin)   f32     -- 1x1-conv weight, transposed
    b_ref : (FIN, 1)     f32     -- bias
    m_ref : (FIN, 1)     f32     -- InformationBottleneck mask
    o_ref : (1, FIN, 1)  f32     -- per-image output block
    acc_ref: (FIN, 1)    f32     -- VMEM scratch: running pool sum
    """
    t = pl.program_id(1)

    @pl.when(t == 0)
    def _init():
        acc_ref[...] = jnp.zeros_like(acc_ref)

    # Upcast after load: bf16 on the wire, f32 on the VPU (v5e-safe).
    x = x_ref[0].astype(jnp.float32)          # (Cin, HWt)
    wt = wt_ref[...]                          # (FIN, Cin)

    # 1x1 conv as Cin unrolled VPU broadcast-MACs: featT = w^T @ x  (FIN, HWt).
    featT = wt[:, 0:1] * x[0:1, :]
    for c in range(1, cin):
        featT = featT + wt[:, c:c + 1] * x[c:c + 1, :]

    featT = jnp.maximum(featT + b_ref[...], 0.0)                 # bias + ReLU
    acc_ref[...] += jnp.sum(featT, axis=-1, keepdims=True)       # partial pool sum

    @pl.when(t == pl.num_programs(1) - 1)
    def _finalize():
        pooled = acc_ref[...] * inv_hw                           # global avg pool
        o_ref[0] = (pooled * m_ref[...]).astype(o_ref.dtype)     # IB mask multiply


def encoder_forward(x_nchw, w, b, mask, *, hw_tile=None):
    """Equivalent of Encoder.forward: backbone stand-in -> IB mask -> flatten."""
    N, Cin, H, W = x_nchw.shape
    FIN = w.shape[1]
    HW = H * W

    if hw_tile is None:
        # Largest lane-aligned tile dividing HW (amortizes ~0.35us/step grid
        # overhead) while leaving double-buffer headroom even for v7x VMEM.
        hw_tile = HW
        for cand in (4096, 2048, 1024, 512, 256, 128):
            if HW % cand == 0:
                hw_tile = cand
                break
    assert HW % hw_tile == 0, "hw_tile must divide H*W"
    n_hw_tiles = HW // hw_tile

    # Pure reshape of NCHW (no transpose): HW lands on the lane axis. bf16 feed.
    x = x_nchw.reshape(N, Cin, HW).astype(jnp.bfloat16)
    wt = jnp.asarray(w, jnp.float32).T.reshape(FIN, Cin)
    b_col = jnp.asarray(b, jnp.float32).reshape(FIN, 1)
    m_col = jnp.asarray(mask, jnp.float32).reshape(FIN, 1)

    kernel = functools.partial(_encoder_kernel, cin=Cin, inv_hw=1.0 / HW)

    pooled = pl.pallas_call(
        kernel,
        out_shape=jax.ShapeDtypeStruct((N, FIN, 1), jnp.float32),
        grid_spec=pltpu.PrefetchScalarGridSpec(
            num_scalar_prefetch=0,
            grid=(N, n_hw_tiles),
            in_specs=[
                pl.BlockSpec((1, Cin, hw_tile), lambda n, t: (n, 0, t)),  # image tile
                pl.BlockSpec((FIN, Cin), lambda n, t: (0, 0)),            # w^T (resident)
                pl.BlockSpec((FIN, 1), lambda n, t: (0, 0)),              # bias
                pl.BlockSpec((FIN, 1), lambda n, t: (0, 0)),              # IB mask
            ],
            # Each image owns its own output block -> batch axis can be parallel.
            out_specs=pl.BlockSpec((1, FIN, 1), lambda n, t: (n, 0, 0)),
            scratch_shapes=[pltpu.VMEM((FIN, 1), jnp.float32)],
        ),
        compiler_params=pltpu.CompilerParams(
            dimension_semantics=("parallel", "arbitrary")),
    )(x, wt, b_col, m_col)

    masked_feats = pooled[:, :, 0]                       # (N, FIN)

    # InformationBottleneck channel selection: num = np.where(mask == 1).
    # NOTE: requires a concrete (non-traced) mask, exactly like the PyTorch code.
    keep = np.where(np.asarray(mask) == 1)[0]
    out = masked_feats[:, keep]                          # masked_x[:, num]
    return out.reshape(N, -1)                            # x.view(x.size(0), -1)


if __name__ == "__main__":
    key = jax.random.PRNGKey(0)
    k_x, k_w, k_b, k_m = jax.random.split(key, 4)

    # Small shapes consistent with the module: NCHW image input, fin features.
    N, Cin, H, W = 2, 4, 16, 16
    FIN = 32

    x = jax.random.normal(k_x, (N, Cin, H, W), dtype=jnp.float32)
    w = jax.random.normal(k_w, (Cin, FIN), dtype=jnp.float32) * 0.1   # backbone 1x1 conv weight
    b = jax.random.normal(k_b, (FIN,), dtype=jnp.float32) * 0.1       # backbone bias
    # Deterministic binary IB mask (ib4m); ensure at least one kept channel.
    mask = (jax.random.uniform(k_m, (FIN,)) > 0.5).astype(jnp.float32)
    mask = mask.at[0].set(1.0)

    # hw_tile=128 so the HW-reduction grid axis is exercised (2 tiles of 256).
    out = encoder_forward(x, w, b, mask, hw_tile=128)
    out = jax.block_until_ready(out)

    # Pure-JAX reference (same bf16 input quantization as the kernel feed).
    x_q = x.reshape(N, Cin, H * W).astype(jnp.bfloat16).astype(jnp.float32)
    x_hwc = jnp.transpose(x_q, (0, 2, 1))                              # (N, HW, Cin)
    ref_feat = jnp.maximum(jnp.einsum("npc,cf->npf", x_hwc, w) + b, 0.0).mean(axis=1)
    keep = np.where(np.asarray(mask) == 1)[0]
    ref = (ref_feat * mask)[:, keep].reshape(N, -1)

    assert out.shape == (N, keep.size)
    assert jnp.allclose(out, ref, atol=1e-4, rtol=1e-4)
    print("KERNEL_OK")
</pallas_src>

<mosaic_0001>
module attributes {stable_mosaic.version = 11 : i64} {
  func.func @_encoder_kernel(%arg0: i32, %arg1: i32, %arg2: memref<1x4x128xbf16, #tpu.memory_space<vmem>>, %arg3: memref<32x4xf32, #tpu.memory_space<vmem>>, %arg4: memref<32x1xf32, #tpu.memory_space<vmem>>, %arg5: memref<32x1xf32, #tpu.memory_space<vmem>>, %arg6: memref<1x32x1xf32, #tpu.memory_space<vmem>>, %arg7: memref<32x1xf32, #tpu.memory_space<vmem>>) attributes {dimension_semantics = [#tpu.dimension_semantics<parallel>, #tpu.dimension_semantics<arbitrary>], iteration_bounds = array<i64: 2, 2>, scalar_prefetch = 0 : i64, scratch_operands = 1 : i64, tpu.core_type = #tpu.core_type<tc>, window_params = [{transform_indices = @transform_0, window_bounds = array<i64: 1, 4, 128>}, {pipeline_mode = #tpu.pipeline_mode<synchronous>, transform_indices = @transform_1, window_bounds = array<i64: 32, 4>}, {pipeline_mode = #tpu.pipeline_mode<synchronous>, transform_indices = @transform_2, window_bounds = array<i64: 32, 1>}, {pipeline_mode = #tpu.pipeline_mode<synchronous>, transform_indices = @transform_3, window_bounds = array<i64: 32, 1>}, {transform_indices = @transform_4, window_bounds = array<i64: 1, 32, 1>}]} {
    %c0_i32 = arith.constant 0 : i32
    %0 = arith.cmpi eq, %arg1, %c0_i32 : i32
    %1 = arith.extui %0 : i1 to i32
    %c0_i32_0 = arith.constant 0 : i32
    %2 = arith.cmpi ne, %1, %c0_i32_0 : i32
    scf.if %2 {
      %cst_13 = arith.constant 0.000000e+00 : f32
      %43 = vector.broadcast %cst_13 : f32 to vector<32x1xf32>
      %c0_14 = arith.constant 0 : index
      %c0_15 = arith.constant 0 : index
      %44 = vector.load %arg7[%c0_14, %c0_15] : memref<32x1xf32, #tpu.memory_space<vmem>>, vector<32x1xf32>
      tpu.vector_store %arg7[%c0_14, %c0_15], %43 {strides = array<i32>} : memref<32x1xf32, #tpu.memory_space<vmem>>, vector<32x1xf32>,
    } else {
    }
    %c0 = arith.constant 0 : index
    %c0_1 = arith.constant 0 : index
    %c0_2 = arith.constant 0 : index
    %3 = vector.load %arg2[%c0, %c0_1, %c0_2] : memref<1x4x128xbf16, #tpu.memory_space<vmem>>, vector<1x4x128xbf16>
    %4 = vector.shape_cast %3 : vector<1x4x128xbf16> to vector<4x128xbf16>
    %5 = arith.extf %4 : vector<4x128xbf16> to vector<4x128xf32>
    %c0_3 = arith.constant 0 : index
    %c0_4 = arith.constant 0 : index
    %6 = vector.load %arg3[%c0_3, %c0_4] : memref<32x4xf32, #tpu.memory_space<vmem>>, vector<32x4xf32>
    %7 = vector.extract_strided_slice %6 {offsets = [0, 0], sizes = [32, 1], strides = [1, 1]} : vector<32x4xf32> to vector<32x1xf32>
    %8 = vector.extract_strided_slice %5 {offsets = [0, 0], sizes = [1, 128], strides = [1, 1]} : vector<4x128xf32> to vector<1x128xf32>
    %9 = vector.broadcast %7 : vector<32x1xf32> to vector<32x128xf32>
    %10 = vector.broadcast %8 : vector<1x128xf32> to vector<32x128xf32>
    %11 = arith.mulf %9, %10 : vector<32x128xf32>
    %12 = vector.extract_strided_slice %6 {offsets = [0, 1], sizes = [32, 1], strides = [1, 1]} : vector<32x4xf32> to vector<32x1xf32>
    %13 = vector.extract_strided_slice %5 {offsets = [1, 0], sizes = [1, 128], strides = [1, 1]} : vector<4x128xf32> to vector<1x128xf32>
    %14 = vector.broadcast %12 : vector<32x1xf32> to vector<32x128xf32>
    %15 = vector.broadcast %13 : vector<1x128xf32> to vector<32x128xf32>
    %16 = arith.mulf %14, %15 : vector<32x128xf32>
    %17 = arith.addf %11, %16 : vector<32x128xf32>
    %18 = vector.extract_strided_slice %6 {offsets = [0, 2], sizes = [32, 1], strides = [1, 1]} : vector<32x4xf32> to vector<32x1xf32>
    %19 = vector.extract_strided_slice %5 {offsets = [2, 0], sizes = [1, 128], strides = [1, 1]} : vector<4x128xf32> to vector<1x128xf32>
    %20 = vector.broadcast %18 : vector<32x1xf32> to vector<32x128xf32>
    %21 = vector.broadcast %19 : vector<1x128xf32> to vector<32x128xf32>
    %22 = arith.mulf %20, %21 : vector<32x128xf32>
    %23 = arith.addf %17, %22 : vector<32x128xf32>
    %24 = vector.extract_strided_slice %6 {offsets = [0, 3], sizes = [32, 1], strides = [1, 1]} : vector<32x4xf32> to vector<32x1xf32>
    %25 = vector.extract_strided_slice %5 {offsets = [3, 0], sizes = [1, 128], strides = [1, 1]} : vector<4x128xf32> to vector<1x128xf32>
    %26 = vector.broadcast %24 : vector<32x1xf32> to vector<32x128xf32>
    %27 = vector.broadcast %25 : vector<1x128xf32> to vector<32x128xf32>
    %28 = arith.mulf %26, %27 : vector<32x128xf32>
    %29 = arith.addf %23, %28 : vector<32x128xf32>
    %c0_5 = arith.constant 0 : index
    %c0_6 = arith.constant 0 : index
    %30 = vector.load %arg4[%c0_5, %c0_6] : memref<32x1xf32, #tpu.memory_space<vmem>>, vector<32x1xf32>
    %31 = vector.broadcast %30 : vector<32x1xf32> to vector<32x128xf32>
    %32 = arith.addf %29, %31 : vector<32x128xf32>
    %cst = arith.constant 0.000000e+00 : f32
    %33 = vector.broadcast %cst : f32 to vector<32x128xf32>
    %34 = arith.maximumf %32, %33 : vector<32x128xf32>
    %c0_7 = arith.constant 0 : index
    %c0_8 = arith.constant 0 : index
    %35 = vector.load %arg7[%c0_7, %c0_8] : memref<32x1xf32, #tpu.memory_space<vmem>>, vector<32x1xf32>
    %cst_9 = arith.constant dense<0.000000e+00> : vector<32xf32>
    %36 = vector.multi_reduction <add>, %34, %cst_9 [1] : vector<32x128xf32> to vector<32xf32>
    %37 = vector.shape_cast %36 : vector<32xf32> to vector<32x1xf32>
    %38 = arith.addf %35, %37 : vector<32x1xf32>
    %c0_10 = arith.constant 0 : index
    %c0_11 = arith.constant 0 : index
    %39 = vector.load %arg7[%c0_10, %c0_11] : memref<32x1xf32, #tpu.memory_space<vmem>>, vector<32x1xf32>
    tpu.vector_store %arg7[%c0_10, %c0_11], %38 {strides = array<i32>} : memref<32x1xf32, #tpu.memory_space<vmem>>, vector<32x1xf32>,
    %c1_i32 = arith.constant 1 : i32
    %40 = arith.cmpi eq, %arg1, %c1_i32 : i32
    %41 = arith.extui %40 : i1 to i32
    %c0_i32_12 = arith.constant 0 : i32
    %42 = arith.cmpi ne, %41, %c0_i32_12 : i32
    scf.if %42 {
      %c0_13 = arith.constant 0 : index
      %c0_14 = arith.constant 0 : index
      %43 = vector.load %arg7[%c0_13, %c0_14] : memref<32x1xf32, #tpu.memory_space<vmem>>, vector<32x1xf32>
      %cst_15 = arith.constant 3.906250e-03 : f32
      %44 = vector.broadcast %cst_15 : f32 to vector<32x1xf32>
      %45 = arith.mulf %43, %44 : vector<32x1xf32>
      %c0_16 = arith.constant 0 : index
      %c0_17 = arith.constant 0 : index
      %46 = vector.load %arg5[%c0_16, %c0_17] : memref<32x1xf32, #tpu.memory_space<vmem>>, vector<32x1xf32>
      %47 = arith.mulf %45, %46 : vector<32x1xf32>
      %c0_18 = arith.constant 0 : index
      %c0_19 = arith.constant 0 : index
      %c0_20 = arith.constant 0 : index
      %48 = vector.load %arg6[%c0_18, %c0_19, %c0_20] : memref<1x32x1xf32, #tpu.memory_space<vmem>>, vector<1x32x1xf32>
      %49 = vector.shape_cast %48 : vector<1x32x1xf32> to vector<32x1xf32>
      %50 = vector.shape_cast %47 : vector<32x1xf32> to vector<1x32x1xf32>
      tpu.vector_store %arg6[%c0_18, %c0_19, %c0_20], %50 {strides = array<i32>} : memref<1x32x1xf32, #tpu.memory_space<vmem>>, vector<1x32x1xf32>,
    } else {
    }
    return
  }
  func.func @transform_0(%arg0: i32, %arg1: i32) -> (i32, i32, i32) {
    %c0_i32 = arith.constant 0 : i32
    %c0_i32_0 = arith.constant 0 : i32
    return %arg0, %c0_i32, %arg1 : i32, i32, i32
  }
  func.func @transform_1(%arg0: i32, %arg1: i32) -> (i32, i32) {
    %c0_i32 = arith.constant 0 : i32
    %c0_i32_0 = arith.constant 0 : i32
    %c0_i32_1 = arith.constant 0 : i32
    return %c0_i32, %c0_i32_0 : i32, i32
  }
  func.func @transform_2(%arg0: i32, %arg1: i32) -> (i32, i32) {
    %c0_i32 = arith.constant 0 : i32
    %c0_i32_0 = arith.constant 0 : i32
    %c0_i32_1 = arith.constant 0 : i32
    return %c0_i32, %c0_i32_0 : i32, i32
  }
  func.func @transform_3(%arg0: i32, %arg1: i32) -> (i32, i32) {
    %c0_i32 = arith.constant 0 : i32
    %c0_i32_0 = arith.constant 0 : i32
    %c0_i32_1 = arith.constant 0 : i32
    return %c0_i32, %c0_i32_0 : i32, i32
  }
  func.func @transform_4(%arg0: i32, %arg1: i32) -> (i32, i32, i32) {
    %c0_i32 = arith.constant 0 : i32
    %c0_i32_0 = arith.constant 0 : i32
    %c0_i32_1 = arith.constant 0 : i32
    return %arg0, %c0_i32, %c0_i32_0 : i32, i32, i32
  }
}

</mosaic_0001>

<bundles_post_ra>
// kernel: tpu_custom_call.1
= control target key start
LH: loop header
LB: loop body
LE: loop exit
PB: predicated region body
PF: predicated region fallthrough
CT: control target
= control target key end

     0   :  { %s626_s15 = smov 0   ;;  %s628_s16 = smov 0   ;;  %s736_s0 = inlined_call_operand.vmem [shape: bf16[2,4,256], index: 0, kind: input, shape index: {}]   ;;  %s737_s1 = inlined_call_operand.vmem [shape: f32[32,4], index: 1, kind: input, shape index: {}]   ;;  %s738_s2 = inlined_call_operand.vmem [shape: f32[32,1], index: 2, kind: input, shape index: {}]   ;;  %s739_s3 = inlined_call_operand.vmem [shape: f32[32,1], index: 3, kind: input, shape index: {}]   ;;  %s740_s4 = inlined_call_operand.vmem [shape: f32[2,32,1], index: 4, kind: output, shape index: {}]  }
   0x1   :  { %s630_s17 = smov 0   ;;  %s632_s18 = smov 0  }
   0x2   :  { %s634_s19 = smov 0  }
   0x3 LB: > { %s23_s20 = sadd.s32 1, %s586_s17  ;;  %s26_s21 = sadd.s32 1, %s590_s18  ;;  %s594_s19 = sphi %s634_s19, %s14_s19   ;;  %s590_s18 = sphi %s632_s18, %s744_s18   ;;  %s586_s17 = sphi %s630_s17, %s743_s17   ;;  %s582_s16 = sphi %s628_s16, %s742_s16   ;;  %s578_s15 = sphi %s626_s15, %s741_s15  }
   0x4   : > { %p24_p0 = scmp.ge.s32.totalorder %s23_s20, 2  ;;  %p489_p1 = scmp.ge.s32.totalorder %s594_s19, 1 }
   0x5   : > { %p179_p2 = scmp.lt.s32.totalorder %s594_s19, 5 }
   0x6   : > { %s746_s20 = smov (%p24_p0, %s23_s20), 0  ;;  %s748_s21 = smov (!%p24_p0, %s26_s21), %s590_s18 }
   0x7   : > { %p180_p3 = pnand %p489_p1, %p179_p2  ;;  %p28_p4 = scmp.ge.s32.totalorder %s748_s21, 2 }
   0x8   : > { %p208_p5 = scmp.lt.s32.totalorder (!%p180_p3), %s582_s16, 1  ;;  %p210_p6 = scmp.lt.s32.totalorder (!%p180_p3), %s578_s15, 1 }
   0x9   : > { %s750_s21 = smov (%p28_p4, %s748_s21), 0  ;;  %183 = sbr.rel (%p180_p3) target bundleno = 341 (0x155), region = 36 }
   0xa   : > { %p494_p7 = scmp.ne.s32.totalorder (!%p180_p3), %s578_s15, 0 }
   0xe   : > { %s752_s16 = smov (!%p208_p5, %s582_s16), 1 }
   0xf   : > { %s211_s22 = scalar_select %p210_p6, %s578_s15, 1 }
  0x10   : > { %s490_s23 = sshll.u32 %s752_s16, 1  ;;  %s498_s24 = sshll.u32 %s752_s16, 5 }
  0x11   : > { %s213_s25 = sadd.s32 %s490_s23, %s211_s22  ;;  %s663_s28 = scalar_lea.vmem %s740_s4, %s498_s24 }
  0x12   : > { %s491_s29 = sshll.u32 %s213_s25, 1  ;;  %224 = sbr.rel (%p494_p7) target bundleno = 28 (0x1c), region = 40 }
  0x13   : > { %s668_s6 = scalar_lea.vmem %s736_s0, %s491_s29 }
  0x17   : > { %vm225_vm0 = vcmask 7168   ;;  %v596_v0 = vmov 0.0  }
  0x18   : > { %226 = vst.msk [vmem:[#allocation2] sm:$0xff] %vm225_vm0, %v596_v0 }
  0x19   : > { %227 = vst.msk [vmem:[#allocation2 + $0x8] sm:$0xff] %vm225_vm0, %v596_v0 }
  0x1a   : > { %228 = vst.msk [vmem:[#allocation2 + $0x10] sm:$0xff] %vm225_vm0, %v596_v0 }
  0x1b   : > { %229 = vst.msk [vmem:[#allocation2 + $0x18] sm:$0xff] %vm225_vm0, %v596_v0 }
  0x1c PF: > { %v234_v1 = vld [vmem:[%s737_s1 + $0x10] sm:$0xff]  ;;  %v232_v2 = vld [vmem:[%s737_s1] sm:$0xff]  ;;  %v597_v3 = vmov 1   ;;  %v598_v4 = vmov 0   ;;  %v235_v5 = vld [vmem:[%s737_s1 + $0x18] sm:$0xff]  ;;  %v599_v7 = vmov 2  }
  0x1d   : > { %546 = vset.pattern.permute.xlu0 %v597_v3  ;;  %544 = vset.pattern.permute.xlu1 %v598_v4  ;;  %v233_v6 = vld [vmem:[%s737_s1 + $0x8] sm:$0xff]  ;;  %v336_v8 = vld [vmem:[%s738_s2] sm:$0xff]  ;;  %v600_v9 = vmov 3   ;;  %v338_v11 = vld [vmem:[%s738_s2 + $0x10] sm:$0xff]  ;;  %vm384_vm1 = vcmask 7168   ;;  %p495_p8 = scmp.ne.s32.totalorder %s578_s15, 1 }
  0x1e   : > { %545 = vset.pattern.permute.xlu2 %v597_v3  ;;  %270 = vperm.xlu0 %546, %v234_v1   ;;  %v337_v10 = vld [vmem:[%s738_s2 + $0x8] sm:$0xff]  ;;  %v339_v12 = vld [vmem:[%s738_s2 + $0x18] sm:$0xff]  ;;  %v230_v21 = vld [vmem:[%s668_s6] sm:$0x3] }
  0x1f   : > { %248 = vperm.xlu1 %544, %v234_v1   ;;  %262 = vperm.xlu2 %545, %v232_v2   ;;  %v231_v24 = vunpack.c.l.bf16 %v230_v21 }
  0x21   : > { %v256_v25 = vperm.slane %v231_v24, 0  ;;  %v277_v28 = vperm.slane %v231_v24, 1  ;;  %v302_v31 = vperm.slane %v231_v24, 2  ;;  %v327_v35 = vperm.slane %v231_v24, 3 }
  0x26   : > { %550 = vset.pattern.permute.xlu0 %v599_v7 }
  0x27   : > { %253 = vperm.xlu1 %544, %v235_v5   ;;  %299 = vperm.xlu0 %550, %v235_v5  }
  0x28   : > { %266 = vperm.xlu2 %545, %v233_v6  }
  0x2f   : > { %547 = vset.pattern.permute.xlu1 %v597_v3  ;;  %551 = vset.pattern.permute.xlu0 %v598_v4 }
  0x30   : > { %274 = vperm.xlu1 %547, %v235_v5   ;;  %548 = vset.pattern.permute.xlu2 %v599_v7 }
  0x31   : > { %238 = vperm.xlu0 %551, %v232_v2   ;;  %287 = vperm.xlu2 %548, %v232_v2  }
  0x38   : > { %549 = vset.pattern.permute.xlu1 %v599_v7 }
  0x39   : > { %291 = vperm.xlu1 %549, %v233_v6   ;;  %243 = vperm.xlu0 %551, %v233_v6  }
  0x3a   : > { %295 = vperm.xlu2 %548, %v234_v1  }
  0x41   : > { %552 = vset.pattern.permute.xlu1 %v600_v9  ;;  %342 = vperm.xlu0 %551, %v336_v8  }
  0x42   : > { %312 = vperm.xlu1 %552, %v232_v2   ;;  %553 = vset.pattern.permute.xlu2 %v600_v9 }
  0x43   : > { %316 = vperm.xlu2 %553, %v233_v6  }
  0x4a   : > { %320 = vperm.xlu1 %552, %v234_v1  }
  0x4b   : > { %324 = vperm.xlu2 %553, %v235_v5  }
  0x52   : > { %554 = vset.pattern.permute.xlu1 %v598_v4 }
  0x53   : > { %347 = vperm.xlu1 %554, %v337_v10   ;;  %555 = vset.pattern.permute.xlu2 %v598_v4 }
  0x54   : > { %352 = vperm.xlu2 %555, %v338_v11   ;;  %v368_v11 = vld [vmem:[#allocation2] sm:$0xff] }
  0x5b   : > { %357 = vperm.xlu1 %554, %v339_v12  }
  0x79   : > { %v263_v13 = vpop.permute.xlu2 %262 }
  0x7a   : > { %v278_v30 = vmul.f32 %v277_v28, %v263_v13 }
  0x82   : > { %v267_v14 = vpop.permute.xlu2 %266 }
  0x83   : > { %v279_v48 = vmul.f32 %v277_v28, %v267_v14  ;;  %v370_v14 = vld [vmem:[#allocation2 + $0x10] sm:$0xff] }
  0x8b   : > { %v288_v18 = vpop.permute.xlu2 %287 }
  0x8c   : > { %v303_v33 = vmul.f32 %v302_v31, %v288_v18 }
  0x90   : > { %v271_v16 = vpop.permute.xlu0 %270 }
  0x91   : > { %v249_v15 = vpop.permute.xlu1 %248  ;;  %v280_v37 = vmul.f32 %v277_v28, %v271_v16 }
  0x92   : > { %v259_v38 = vmul.f32 %v256_v25, %v249_v15 }
  0x94   : > { %v296_v22 = vpop.permute.xlu2 %295  ;;  %v284_v45 = vadd.f32 %v280_v37, %v259_v38 }
  0x95   : > { %v305_v46 = vmul.f32 %v302_v31, %v296_v22 }
  0x97   : > { %v309_v52 = vadd.f32 %v305_v46, %v284_v45 }
  0x99   : > { %v254_v17 = vpop.permute.xlu1 %253  ;;  %v300_v19 = vpop.permute.xlu0 %299 }
  0x9a   : > { %v260_v61 = vmul.f32 %v256_v25, %v254_v17  ;;  %v306_v63 = vmul.f32 %v302_v31, %v300_v19  ;;  %v369_v17 = vld [vmem:[#allocation2 + $0x8] sm:$0xff] }
  0x9d   : > { %v317_v27 = vpop.permute.xlu2 %316 }
  0x9e   : > { %v329_v57 = vmul.f32 %v327_v35, %v317_v27 }
  0xa2   : > { %v275_v20 = vpop.permute.xlu1 %274 }
  0xa3   : > { %v239_v23 = vpop.permute.xlu0 %238  ;;  %v281_v58 = vmul.f32 %v277_v28, %v275_v20  ;;  %v371_v20 = vld [vmem:[#allocation2 + $0x18] sm:$0xff] }
  0xa4   : > { %v257_v29 = vmul.f32 %v256_v25, %v239_v23 }
  0xa5   : > { %v325_v41 = vpop.permute.xlu2 %324  ;;  %v285_v0 = vadd.f32 %v281_v58, %v260_v61 }
  0xa6   : > { %v282_v34 = vadd.f32 %v278_v30, %v257_v29  ;;  %v331_v4 = vmul.f32 %v327_v35, %v325_v41 }
  0xa7   : > { %v310_v6 = vadd.f32 %v306_v63, %v285_v0 }
  0xa8   : > { %v307_v40 = vadd.f32 %v303_v33, %v282_v34 }
  0xa9   : > { %v335_v7 = vadd.f32 %v331_v4, %v310_v6 }
  0xab   : > { %v292_v26 = vpop.permute.xlu1 %291  ;;  %v244_v32 = vpop.permute.xlu0 %243 }
  0xac   : > { %v258_v43 = vmul.f32 %v256_v25, %v244_v32  ;;  %v304_v54 = vmul.f32 %v302_v31, %v292_v26 }
  0xae   : > { %v283_v50 = vadd.f32 %v279_v48, %v258_v43  ;;  %v353_v55 = vpop.permute.xlu2 %352 }
  0xb0   : > { %v308_v59 = vadd.f32 %v304_v54, %v283_v50 }
  0xb2   : > { %v333_v1 = vadd.f32 %v329_v57, %v308_v59 }
  0xb3   : > { %v343_v44 = vpop.permute.xlu0 %342 }
  0xb4   : > { %v313_v36 = vpop.permute.xlu1 %312 }
  0xb5   : > { %v328_v39 = vmul.f32 %v327_v35, %v313_v36 }
  0xb7   : > { %v332_v42 = vadd.f32 %v328_v39, %v307_v40 }
  0xb9   : > { %v360_v47 = vadd.f32 %v343_v44, %v332_v42 }
  0xbb   : > { %v364_v49 = vmax.f32 %v360_v47, 0.0 }
  0xbc   : > { %v321_v51 = vpop.permute.xlu1 %320 }
  0xbd   : > { %v330_v53 = vmul.f32 %v327_v35, %v321_v51  ;;  %372 = vadd.xlane.f32.xlu2 %v364_v49 }
  0xbf   : > { %v334_v56 = vadd.f32 %v330_v53, %v309_v52 }
  0xc1   : > { %v362_v60 = vadd.f32 %v353_v55, %v334_v56 }
  0xc3   : > { %v366_v62 = vmax.f32 %v362_v60, 0.0 }
  0xc5   : > { %v348_v2 = vpop.permute.xlu1 %347  ;;  %376 = vadd.xlane.f32.xlu1 %v366_v62 }
  0xc6   : > { %v361_v3 = vadd.f32 %v348_v2, %v333_v1 }
  0xc8   : > { %v365_v5 = vmax.f32 %v361_v3, 0.0 }
  0xca   : > { %374 = vadd.xlane.f32.xlu0 %v365_v5 }
  0xcd   : > { %v358_v8 = vpop.permute.xlu1 %357 }
  0xce   : > { %v363_v9 = vadd.f32 %v358_v8, %v335_v7 }
  0xd0   : > { %v367_v10 = vmax.f32 %v363_v9, 0.0 }
  0xd2   : > { %378 = vadd.xlane.f32.xlu2 %v367_v10 }
 0x130   : > { %v373_v12 = vpop.xlane.xlu2 %372 }
 0x131   : > { %v380_v13 = vadd.f32 %v373_v12, %v368_v11 }
 0x133   : > { %385 = vst.msk [vmem:[#allocation2] sm:$0xff] %vm384_vm1, %v380_v13 }
 0x138   : > { %v377_v15 = vpop.xlane.xlu1 %376 }
 0x139   : > { %v382_v16 = vadd.f32 %v377_v15, %v370_v14 }
 0x13b   : > { %387 = vst.msk [vmem:[#allocation2 + $0x10] sm:$0xff] %vm384_vm1, %v382_v16 }
 0x13d   : > { %v375_v18 = vpop.xlane.xlu0 %374 }
 0x13e   : > { %v381_v19 = vadd.f32 %v375_v18, %v369_v17 }
 0x140   : > { %386 = vst.msk [vmem:[#allocation2 + $0x8] sm:$0xff] %vm384_vm1, %v381_v19 }
 0x144   : > { %392 = sbr.rel (%p495_p8) target bundleno = 341 (0x155), region = 44 }
 0x145   : > { %v379_v21 = vpop.xlane.xlu2 %378 }
 0x146   : > { %v383_v22 = vadd.f32 %v379_v21, %v371_v20 }
 0x148   : > { %388 = vst.msk [vmem:[#allocation2 + $0x18] sm:$0xff] %vm384_vm1, %v383_v22 }
 0x149   : > { %v393_v23 = vld [vmem:[#allocation2] sm:$0xff]  ;;  %v394_v25 = vld [vmem:[#allocation2 + $0x8] sm:$0xff]  ;;  %v395_v29 = vld [vmem:[#allocation2 + $0x10] sm:$0xff] }
 0x14a   : > { %v401_v24 = vld [vmem:[%s739_s3] sm:$0xff]  ;;  %v397_v26 = vmul.f32 0.00390625, %v393_v23  ;;  %v398_v27 = vmul.f32 0.00390625, %v394_v25  ;;  %v402_v28 = vld [vmem:[%s739_s3 + $0x8] sm:$0xff]  ;;  %v403_v30 = vld [vmem:[%s739_s3 + $0x10] sm:$0xff]  ;;  %v399_v31 = vmul.f32 0.00390625, %v395_v29 }
 0x14b   : > { %v404_v33 = vld [vmem:[%s739_s3 + $0x18] sm:$0xff] }
 0x14c   : > { %v405_v34 = vmul.f32 %v401_v24, %v397_v26  ;;  %v406_v35 = vmul.f32 %v402_v28, %v398_v27  ;;  %v407_v37 = vmul.f32 %v403_v30, %v399_v31 }
 0x14e   : > { %409 = vst.msk [vmem:[%s663_s28] sm:$0xff] %vm384_vm1, %v405_v34 }
 0x14f   : > { %v396_v32 = vld [vmem:[#allocation2 + $0x18] sm:$0xff]  ;;  %410 = vst.msk [vmem:[%s663_s28 + $0x8] sm:$0xff] %vm384_vm1, %v406_v35 }
 0x150   : > { %v400_v36 = vmul.f32 0.00390625, %v396_v32  ;;  %411 = vst.msk [vmem:[%s663_s28 + $0x10] sm:$0xff] %vm384_vm1, %v407_v37 }
 0x152   : > { %v408_v38 = vmul.f32 %v404_v33, %v400_v36 }
 0x154   : > { %412 = vst.msk [vmem:[%s663_s28 + $0x18] sm:$0xff] %vm384_vm1, %v408_v38 }
 0x155 PF: > { %s14_s19 = sadd.s32 1, %s594_s19   ;;  %s741_s15 = smov %s586_s17 }
 0x156   : > { %p11_p9 = scmp.ge.s32.totalorder %s14_s19, 6   ;;  %s742_s16 = smov %s590_s18 }
 0x157   : > { %s743_s17 = smov %s746_s20  ;;  %s744_s18 = smov %s750_s21 }
 0x158   :  { %13 = sbr.rel (!%p11_p9) target bundleno = 3 (0x3), region = 74 }

</bundles_post_ra>
